<compile_context>
chip_gen: v6e
topology: v6e:2x2x1
jax: 0.10.0
libtpu: 0.0.40
codegen_flags: <defaults>
</compile_context>

<pallas_src>
import functools

import jax
import jax.numpy as jnp
from jax.experimental import pallas as pl
from jax.experimental.pallas import tpu as pltpu


_DEFAULT_VMEM_BUDGET = 10 * 1024 * 1024  # bytes for 2x(in tile) + 2x(out tile)


def _round_up(v, m):
    return ((v + m - 1) // m) * m


def _pick_row_tile(R, cap_rows, budget_rows):
    """Tile size along a row axis: multiple of 8 (or full dim), >= 2 grid steps when feasible."""
    cap = max(8, min(cap_rows, budget_rows))
    cap = (cap // 8) * 8
    if R > cap:
        return cap                                    # grid >= 2 automatically
    if R > 16:                                        # split so both v7x cores get work
        return min(cap, _round_up(pl.cdiv(R, 2), 8))
    return R                                          # tiny input: one full-dim block


# ----------------------------------------------------------------------------------
# channels_last:  x (..., C), normalize over trailing C  (== F.layer_norm)
# ----------------------------------------------------------------------------------
def _ln_last_kernel(x_ref, w_ref, b_ref, o_ref, *, eps, C):
    x = x_ref[...].astype(jnp.float32)                       # (TR, C)
    inv_c = 1.0 / C
    mean = jnp.sum(x, axis=-1, keepdims=True) * inv_c        # (TR, 1)
    ex2 = jnp.sum(x * x, axis=-1, keepdims=True) * inv_c     # (TR, 1)
    var = jnp.maximum(ex2 - mean * mean, 0.0)                # biased variance, one pass
    inv = jax.lax.rsqrt(var + eps)
    o_ref[...] = ((x - mean) * inv * w_ref[...] + b_ref[...]).astype(o_ref.dtype)


def _ln_last_folded_kernel(x_ref, w_ref, b_ref, bd_ref, bdt_ref, o_ref, *, eps, C):
    # g logical rows are folded onto the 128-lane axis: x tile is (TRg, g*C).
    x = x_ref[...].astype(jnp.float32)                       # (TRg, g*C)
    inv_c = 1.0 / C
    bd = bd_ref[...]                                         # (g*C, g) block-diagonal ones
    bdt = bdt_ref[...]                                       # (g, g*C)
    mean = jnp.dot(x, bd, preferred_element_type=jnp.float32) * inv_c      # (TRg, g)
    ex2 = jnp.dot(x * x, bd, preferred_element_type=jnp.float32) * inv_c   # (TRg, g)
    var = jnp.maximum(ex2 - mean * mean, 0.0)
    inv = jax.lax.rsqrt(var + eps)                           # (TRg, g)
    # Scatter per-row scale/shift back to the lane axis on the MXU (stays lane-dense).
    scale = jnp.dot(inv, bdt, preferred_element_type=jnp.float32)          # (TRg, g*C)
    shift = jnp.dot(mean * inv, bdt, preferred_element_type=jnp.float32)   # (TRg, g*C)
    y = (x * scale - shift) * w_ref[...] + b_ref[...]        # w,b tiled to (1, g*C)
    o_ref[...] = y.astype(o_ref.dtype)


def layer_norm_channels_last(x, weight, bias, eps=1e-6, row_tile=1024,
                             vmem_budget_bytes=_DEFAULT_VMEM_BUDGET):
    """x: (..., C). Equivalent to F.layer_norm(x, (C,), weight, bias, eps)."""
    C = x.shape[-1]
    orig_shape = x.shape
    xr = x.reshape(-1, C)                                    # free (contiguous) reshape
    R = xr.shape[0]
    itemsize = jnp.dtype(x.dtype).itemsize
    budget_elems = max(1, vmem_budget_bytes // (4 * itemsize))  # 2x in + 2x out buffers

    g = 128 // C if (C < 128 and 128 % C == 0) else 1

    if g > 1 and R % g == 0:
        # ---- lane-dense folded path (small C): block last dim = g*C = 128 ----
        gC = g * C
        Rg = R // g
        xg = xr.reshape(Rg, gC)                              # free reshape (row-major)
        TRg = _pick_row_tile(Rg, row_tile, max(8, budget_elems // gC))
        w_t = jnp.tile(weight.astype(jnp.float32).reshape(-1), g).reshape(1, gC)
        b_t = jnp.tile(bias.astype(jnp.float32).reshape(-1), g).reshape(1, gC)
        grp = jnp.arange(gC, dtype=jnp.int32) // C
        bd = (grp[:, None] == jnp.arange(g, dtype=jnp.int32)[None, :]).astype(jnp.float32)
        bdt = bd.T

        kernel = functools.partial(_ln_last_folded_kernel, eps=float(eps), C=C)
        out = pl.pallas_call(
            kernel,
            out_shape=jax.ShapeDtypeStruct((Rg, gC), x.dtype),
            grid_spec=pltpu.PrefetchScalarGridSpec(
                num_scalar_prefetch=0,
                grid=(pl.cdiv(Rg, TRg),),
                in_specs=[pl.BlockSpec((TRg, gC), lambda i: (i, 0)),
                          pl.BlockSpec((1, gC), lambda i: (0, 0)),
                          pl.BlockSpec((1, gC), lambda i: (0, 0)),
                          pl.BlockSpec((gC, g), lambda i: (0, 0)),
                          pl.BlockSpec((g, gC), lambda i: (0, 0))],
                out_specs=pl.BlockSpec((TRg, gC), lambda i: (i, 0))),
            compiler_params=pltpu.CompilerParams(dimension_semantics=("parallel",)),
        )(xg, w_t, b_t, bd, bdt)
        return out.reshape(orig_shape)

    # ---- plain path (C >= 128 or awkward C): block = (TR, C), ragged last block OK ----
    TR = _pick_row_tile(R, row_tile, max(8, budget_elems // C))
    kernel = functools.partial(_ln_last_kernel, eps=float(eps), C=C)
    out = pl.pallas_call(
        kernel,
        out_shape=jax.ShapeDtypeStruct((R, C), x.dtype),
        grid_spec=pltpu.PrefetchScalarGridSpec(
            num_scalar_prefetch=0,
            grid=(pl.cdiv(R, TR),),
            in_specs=[pl.BlockSpec((TR, C), lambda i: (i, 0)),
                      pl.BlockSpec((1, C), lambda i: (0, 0)),
                      pl.BlockSpec((1, C), lambda i: (0, 0))],
            out_specs=pl.BlockSpec((TR, C), lambda i: (i, 0))),
        compiler_params=pltpu.CompilerParams(dimension_semantics=("parallel",)),
    )(xr,
      weight.reshape(1, C).astype(jnp.float32),
      bias.reshape(1, C).astype(jnp.float32))
    return out.reshape(orig_shape)


# ----------------------------------------------------------------------------------
# channels_first:  x (B, C, H, W), normalize over C per spatial position
# ----------------------------------------------------------------------------------
def _ln_first_kernel(x_ref, w_ref, b_ref, o_ref, *, eps, C):
    x = x_ref[...].astype(jnp.float32)                       # (Bt, C, TS): C on sublanes
    inv_c = 1.0 / C
    mean = jnp.sum(x, axis=1, keepdims=True) * inv_c         # (Bt, 1, TS)
    ex2 = jnp.sum(x * x, axis=1, keepdims=True) * inv_c      # (Bt, 1, TS)
    var = jnp.maximum(ex2 - mean * mean, 0.0)
    inv = jax.lax.rsqrt(var + eps)
    y = (x - mean) * inv * w_ref[...] + b_ref[...]           # (C,1) broadcasts over Bt & lanes
    o_ref[...] = y.astype(o_ref.dtype)


def layer_norm_channels_first(x, weight, bias, eps=1e-6, spatial_tile=2048,
                              vmem_budget_bytes=_DEFAULT_VMEM_BUDGET):
    """x: (B, C, H, W). Matches the module's channels_first branch (no transposes)."""
    B, C, H, W = x.shape
    HW = H * W
    xr = x.reshape(B, C, HW)                                 # free reshape
    itemsize = jnp.dtype(x.dtype).itemsize
    budget_elems = max(1, vmem_budget_bytes // (4 * itemsize))

    if HW <= spatial_tile:
        TS = HW                                              # full-dim block (any size OK)
    else:
        TS = max(128, (spatial_tile // 128) * 128)           # lane-dense tile
        TS = min(TS, max(128, (budget_elems // max(C, 1) // 128) * 128))
    n_s = pl.cdiv(HW, TS)

    # Fold batch into the block when HW is small so each step moves a useful amount.
    Bt = max(1, min(B, budget_elems // max(1, C * TS)))
    if n_s == 1 and B > 1:
        Bt = min(Bt, pl.cdiv(B, 2))                          # keep >=2 parallel steps (v7x)
    n_b = pl.cdiv(B, Bt)

    kernel = functools.partial(_ln_first_kernel, eps=float(eps), C=C)
    out = pl.pallas_call(
        kernel,
        out_shape=jax.ShapeDtypeStruct((B, C, HW), x.dtype),
        grid_spec=pltpu.PrefetchScalarGridSpec(
            num_scalar_prefetch=0,
            grid=(n_b, n_s),
            in_specs=[pl.BlockSpec((Bt, C, TS), lambda b, s: (b, 0, s)),
                      pl.BlockSpec((C, 1), lambda b, s: (0, 0)),
                      pl.BlockSpec((C, 1), lambda b, s: (0, 0))],
            out_specs=pl.BlockSpec((Bt, C, TS), lambda b, s: (b, 0, s))),
        compiler_params=pltpu.CompilerParams(
            dimension_semantics=("parallel", "parallel")),
    )(xr,
      weight.reshape(C, 1).astype(jnp.float32),
      bias.reshape(C, 1).astype(jnp.float32))
    return out.reshape(B, C, H, W)


# ----------------------------------------------------------------------------------
# Pure-JAX references (mirror the PyTorch module exactly)
# ----------------------------------------------------------------------------------
def _ref_channels_last(x, w, b, eps):
    mean = x.mean(-1, keepdims=True)
    var = ((x - mean) ** 2).mean(-1, keepdims=True)
    return (x - mean) / jnp.sqrt(var + eps) * w + b


def _ref_channels_first(x, w, b, eps):
    u = x.mean(1, keepdims=True)
    s = ((x - u) ** 2).mean(1, keepdims=True)
    xn = (x - u) / jnp.sqrt(s + eps)
    return w[None, :, None, None] * xn + b[None, :, None, None]


if __name__ == "__main__":
    key = jax.random.PRNGKey(0)
    ks = jax.random.split(key, 12)
    eps = 1e-6

    # ---- channels_first: (B, C, H, W), batch-blocked, TS = full HW ----
    B, C, H, W = 2, 32, 16, 16
    x = jax.random.normal(ks[0], (B, C, H, W), jnp.float32)
    w = 1.0 + 0.5 * jax.random.normal(ks[1], (C,), jnp.float32)
    b = 0.1 * jax.random.normal(ks[2], (C,), jnp.float32)
    out = jax.block_until_ready(layer_norm_channels_first(x, w, b, eps))
    ref = _ref_channels_first(x, w, b, eps)
    assert out.shape == x.shape
    assert jnp.allclose(out, ref, rtol=1e-4, atol=1e-4), (
        f"channels_first max abs diff = {jnp.max(jnp.abs(out - ref))}")

    # ---- channels_first: ragged batch block (B=3 -> Bt=2) and non-multiple-of-128 HW ----
    B, C, H, W = 3, 32, 7, 9
    x = jax.random.normal(ks[3], (B, C, H, W), jnp.float32)
    w = 1.0 + 0.5 * jax.random.normal(ks[4], (C,), jnp.float32)
    b = 0.1 * jax.random.normal(ks[5], (C,), jnp.float32)
    out = jax.block_until_ready(layer_norm_channels_first(x, w, b, eps))
    ref = _ref_channels_first(x, w, b, eps)
    assert jnp.allclose(out, ref, rtol=1e-4, atol=1e-4), (
        f"channels_first (ragged) max abs diff = {jnp.max(jnp.abs(out - ref))}")

    # ---- channels_last, small C (lane-folded + MXU reduction path) ----
    B, H, W, C = 2, 16, 16, 32
    x = jax.random.normal(ks[6], (B, H, W, C), jnp.float32)
    w = 1.0 + 0.5 * jax.random.normal(ks[7], (C,), jnp.float32)
    b = 0.1 * jax.random.normal(ks[8], (C,), jnp.float32)
    out = jax.block_until_ready(layer_norm_channels_last(x, w, b, eps))
    ref = _ref_channels_last(x, w, b, eps)
    assert out.shape == x.shape
    assert jnp.allclose(out, ref, rtol=1e-4, atol=1e-4), (
        f"channels_last (folded) max abs diff = {jnp.max(jnp.abs(out - ref))}")

    # ---- channels_last, C = 128 (plain path, ragged last row tile) ----
    B, H, W, C = 2, 5, 5, 128
    x = jax.random.normal(ks[9], (B, H, W, C), jnp.float32)
    w = 1.0 + 0.5 * jax.random.normal(ks[10], (C,), jnp.float32)
    b = 0.1 * jax.random.normal(ks[11], (C,), jnp.float32)
    out = jax.block_until_ready(layer_norm_channels_last(x, w, b, eps))
    ref = _ref_channels_last(x, w, b, eps)
    assert jnp.allclose(out, ref, rtol=1e-4, atol=1e-4), (
        f"channels_last (plain) max abs diff = {jnp.max(jnp.abs(out - ref))}")

    print("KERNEL_OK")
</pallas_src>

<mosaic_0001>
module attributes {stable_mosaic.version = 11 : i64} {
  func.func @_ln_first_kernel(%arg0: i32, %arg1: i32, %arg2: memref<1x32x256xf32, #tpu.memory_space<vmem>>, %arg3: memref<32x1xf32, #tpu.memory_space<vmem>>, %arg4: memref<32x1xf32, #tpu.memory_space<vmem>>, %arg5: memref<1x32x256xf32, #tpu.memory_space<vmem>>) attributes {dimension_semantics = [#tpu.dimension_semantics<parallel>, #tpu.dimension_semantics<parallel>], iteration_bounds = array<i64: 2, 1>, scalar_prefetch = 0 : i64, scratch_operands = 0 : i64, tpu.core_type = #tpu.core_type<tc>, window_params = [{transform_indices = @transform_0, window_bounds = array<i64: 1, 32, 256>}, {pipeline_mode = #tpu.pipeline_mode<synchronous>, transform_indices = @transform_1, window_bounds = array<i64: 32, 1>}, {pipeline_mode = #tpu.pipeline_mode<synchronous>, transform_indices = @transform_2, window_bounds = array<i64: 32, 1>}, {transform_indices = @transform_3, window_bounds = array<i64: 1, 32, 256>}]} {
    %c0 = arith.constant 0 : index
    %c0_0 = arith.constant 0 : index
    %c0_1 = arith.constant 0 : index
    %0 = vector.load %arg2[%c0, %c0_0, %c0_1] : memref<1x32x256xf32, #tpu.memory_space<vmem>>, vector<1x32x256xf32>
    %cst = arith.constant dense<0.000000e+00> : vector<1x256xf32>
    %1 = vector.multi_reduction <add>, %0, %cst [1] : vector<1x32x256xf32> to vector<1x256xf32>
    %2 = vector.shape_cast %1 : vector<1x256xf32> to vector<1x1x256xf32>
    %cst_2 = arith.constant 3.125000e-02 : f32
    %3 = vector.broadcast %cst_2 : f32 to vector<1x1x256xf32>
    %4 = arith.mulf %2, %3 : vector<1x1x256xf32>
    %5 = arith.mulf %0, %0 : vector<1x32x256xf32>
    %cst_3 = arith.constant dense<0.000000e+00> : vector<1x256xf32>
    %6 = vector.multi_reduction <add>, %5, %cst_3 [1] : vector<1x32x256xf32> to vector<1x256xf32>
    %7 = vector.shape_cast %6 : vector<1x256xf32> to vector<1x1x256xf32>
    %cst_4 = arith.constant 3.125000e-02 : f32
    %8 = vector.broadcast %cst_4 : f32 to vector<1x1x256xf32>
    %9 = arith.mulf %7, %8 : vector<1x1x256xf32>
    %10 = arith.mulf %4, %4 : vector<1x1x256xf32>
    %11 = arith.subf %9, %10 : vector<1x1x256xf32>
    %cst_5 = arith.constant 0.000000e+00 : f32
    %12 = vector.broadcast %cst_5 : f32 to vector<1x1x256xf32>
    %13 = arith.maximumf %11, %12 : vector<1x1x256xf32>
    %cst_6 = arith.constant 9.99999997E-7 : f32
    %14 = vector.broadcast %cst_6 : f32 to vector<1x1x256xf32>
    %15 = arith.addf %13, %14 : vector<1x1x256xf32>
    %16 = math.rsqrt %15 : vector<1x1x256xf32>
    %17 = vector.broadcast %4 : vector<1x1x256xf32> to vector<1x32x256xf32>
    %18 = arith.subf %0, %17 : vector<1x32x256xf32>
    %19 = vector.broadcast %16 : vector<1x1x256xf32> to vector<1x32x256xf32>
    %20 = arith.mulf %18, %19 : vector<1x32x256xf32>
    %c0_7 = arith.constant 0 : index
    %c0_8 = arith.constant 0 : index
    %21 = vector.load %arg3[%c0_7, %c0_8] : memref<32x1xf32, #tpu.memory_space<vmem>>, vector<32x1xf32>
    %22 = vector.shape_cast %21 : vector<32x1xf32> to vector<1x32x1xf32>
    %23 = vector.broadcast %22 : vector<1x32x1xf32> to vector<1x32x256xf32>
    %24 = arith.mulf %20, %23 : vector<1x32x256xf32>
    %c0_9 = arith.constant 0 : index
    %c0_10 = arith.constant 0 : index
    %25 = vector.load %arg4[%c0_9, %c0_10] : memref<32x1xf32, #tpu.memory_space<vmem>>, vector<32x1xf32>
    %26 = vector.shape_cast %25 : vector<32x1xf32> to vector<1x32x1xf32>
    %27 = vector.broadcast %26 : vector<1x32x1xf32> to vector<1x32x256xf32>
    %28 = arith.addf %24, %27 : vector<1x32x256xf32>
    %c0_11 = arith.constant 0 : index
    %c0_12 = arith.constant 0 : index
    %c0_13 = arith.constant 0 : index
    %29 = vector.load %arg5[%c0_11, %c0_12, %c0_13] : memref<1x32x256xf32, #tpu.memory_space<vmem>>, vector<1x32x256xf32>
    tpu.vector_store %arg5[%c0_11, %c0_12, %c0_13], %28 {strides = array<i32>} : memref<1x32x256xf32, #tpu.memory_space<vmem>>, vector<1x32x256xf32>,
    return
  }
  func.func @transform_0(%arg0: i32, %arg1: i32) -> (i32, i32, i32) {
    %c0_i32 = arith.constant 0 : i32
    %c0_i32_0 = arith.constant 0 : i32
    return %arg0, %c0_i32, %arg1 : i32, i32, i32
  }
  func.func @transform_1(%arg0: i32, %arg1: i32) -> (i32, i32) {
    %c0_i32 = arith.constant 0 : i32
    %c0_i32_0 = arith.constant 0 : i32
    %c0_i32_1 = arith.constant 0 : i32
    return %c0_i32, %c0_i32_0 : i32, i32
  }
  func.func @transform_2(%arg0: i32, %arg1: i32) -> (i32, i32) {
    %c0_i32 = arith.constant 0 : i32
    %c0_i32_0 = arith.constant 0 : i32
    %c0_i32_1 = arith.constant 0 : i32
    return %c0_i32, %c0_i32_0 : i32, i32
  }
  func.func @transform_3(%arg0: i32, %arg1: i32) -> (i32, i32, i32) {
    %c0_i32 = arith.constant 0 : i32
    %c0_i32_0 = arith.constant 0 : i32
    return %arg0, %c0_i32, %arg1 : i32, i32, i32
  }
}

</mosaic_0001>

<bundles_post_ra>
// kernel: tpu_custom_call.1
= control target key start
LH: loop header
LB: loop body
LE: loop exit
PB: predicated region body
PF: predicated region fallthrough
CT: control target
= control target key end

     0   :  { %8 = vsyncpa [#allocation3], 0  ;;  %s925_s0 = inlined_call_operand.hbm [shape: f32[2,32,256], index: 0, kind: input, shape index: {}]   ;;  %s926_s1 = inlined_call_operand.vmem [shape: f32[32,1], index: 1, kind: input, shape index: {}]   ;;  %s927_s2 = inlined_call_operand.vmem [shape: f32[32,1], index: 2, kind: input, shape index: {}]   ;;  %s928_s3 = inlined_call_operand.hbm [shape: f32[2,32,256], index: 3, kind: output, shape index: {}]  }
   0x1   :  { %10 = vsyncpa [#allocation3 + $0x1], 0 }
   0x2   :  { %11 = vsyncpa [#allocation4], 0 }
   0x3   :  { %13 = vsyncpa [#allocation4 + $0x1], 0  ;;  %s693_s12 = smov 0   ;;  %s695_s13 = smov 0  }
   0x4   :  { %s697_s14 = smov 0   ;;  %s699_s15 = smov 0  }
   0x5   :  { %s701_s16 = smov 0   ;;  %s703_s17 = smov 0  }
   0x6 LB: > { %s466_s18 = sadd.s32 4294967295, %s664_s17   ;;  %s467_s19 = sadd.s32 4294967294, %s664_s17   ;;  %s664_s17 = sphi %s703_s17, %s19_s17   ;;  %s660_s16 = sphi %s701_s16, %s939_s16   ;;  %s656_s15 = sphi %s699_s15, %s938_s15   ;;  %s652_s14 = sphi %s697_s14, %s937_s14   ;;  %s648_s13 = sphi %s695_s13, %s936_s13   ;;  %s644_s12 = sphi %s693_s12, %s935_s12  }
   0x7   : > { %s31_s20 = sadd.s32 1, %s660_s16  ;;  %s40_s21 = sadd.s32 1, %s652_s14 }
   0x8   : > { %p33_p0 = scmp.ge.s32.totalorder %s31_s20, 2  ;;  %p47_p1 = scmp.ne.s32.totalorder %s652_s14, %s648_s13 }
   0x9   : > { %p48_p2 = scmp.eq.s32.totalorder %s664_s17, 0  ;;  %p53_p3 = scmp.ne.s32.totalorder %s648_s13, %s644_s12 }
   0xa   : > { %s941_s20 = smov (%p33_p0, %s31_s20), 0  ;;  %p54_p5 = scmp.eq.s32.totalorder %s466_s18, 0 }
   0xb   : > { %p734_p4 = por %p48_p2, %p47_p1  ;;  %s35_s23 = ssub.s32 %s660_s16, %s941_s20 }
   0xc   : > { %p121_p6 = scmp.eq.s32.totalorder %s466_s18, 1  ;;  %p38_p7 = scmp.eq.s32.totalorder %s35_s23, 0 }
   0xd   : > { %p740_p8 = por %p54_p5, %p53_p3  ;;  %p127_p10 = scmp.eq.s32.totalorder %s467_s19, 1 }
   0xe   : > { %p744_p9 = por %p121_p6, %p47_p1  ;;  %p495_p13 = scmp.lt.s32.totalorder %s664_s17, 2 }
   0xf   : > { %s749_s26 = scalar_select %p38_p7, %s652_s14, %s40_s21  }
  0x10   : > { %p751_p11 = por %p127_p10, %p53_p3  ;;  %s153_s28 = sand.u32 1, %s652_s14  }
  0x11   : > { %s470_s29 = sshll.u32 %s153_s28, 6  ;;  %s481_s30 = sshll.u32 %s660_s16, 10 }
  0x12   : > { %s165_s6 = scalar_lea.hbm %s925_s0, %s481_s30  ;;  %s157_s7 = scalar_lea.vmem [#allocation2], %s470_s29 }
  0x13   : > { %s166_s8 = sshll.u32 %s157_s7, 4  ;;  %p764_p0 = pnand %p495_p13, %p734_p4  ;;  %s167_s8 = int_to_ptr.vmem [resolvable:$true] %s166_s8 }
  0x14   : > { %p473_p1 = scmp.ge.s32.totalorder %s664_s17, 1  ;;  %s154_s10 = scalar_lea.sflag [#allocation3], %s153_s28 }
  0x15   : > { %p558_p2 = pneg %p764_p0  ;;  %s569_s11 = scalar_lea.vmem %s167_s8, 1024 }
  0x16   : > { %p570_p3 = scmp.ne.s32.totalorder %s167_s8, %s569_s11  ;;  %s666_s18 = smov [#allocation2]  }
  0x17   : > { %s574_s19 = sshll.u32 %s666_s18, 4  ;;  %s575_s19 = int_to_ptr.vmem [resolvable:$false] %s574_s19 }
  0x18   : > { %p572_p5 = pnand %p570_p3, %p558_p2  ;;  %s576_s21 = scalar_lea.vmem %s575_s19, 2048 }
  0x19   : > { %p577_p7 = scmp.lt.s32.totalorder %s167_s8, %s575_s19  ;;  %p578_p10 = scmp.lt.s32.totalorder %s576_s21, %s569_s11 }
  0x1a   : > { %p573_p6 = pneg %p572_p5 }
  0x1b   : > { %p579_p12 = por %p578_p10, %p577_p7 }
  0x1d   : > { %p580_p4 = pnand %p579_p12, %p573_p6 }
  0x1f   : > { %583 = shalt.err (!%p580_p4)
}
  0x20   : > { %s667_s22 = smov 256   ;;  %s668_s23 = smov 16  }
  0x21   : > { %490 = dma.hbm_to_vmem [thread:$0]  (!%p764_p0), %s165_s6, 1024, %s167_s8, %s154_s10, %s667_s22, %s667_s22, %s668_s23  }
  0x22   : > { %p174_p13 = scmp.lt.s32.totalorder %s664_s17, 3 }
  0x24   : > { %p175_p2 = pnand %p473_p1, %p174_p13 }
  0x25   : > { %s777_s28 = sand.u32 (!%p175_p2), 1, %s648_s13  }
  0x26   : > { %178 = sbr.rel (%p175_p2) target bundleno = 199 (0xc7), region = 32  ;;  %s474_s29 = sshll.u32 (!%p175_p2), %s777_s28, 6 }
  0x27   : > { %s181_s30 = scalar_lea.sflag (!%p175_p2), [#allocation3], %s777_s28  ;;  %s783_s4 = scalar_lea.vmem (!%p175_p2), [#allocation2], %s474_s29 }
  0x2b   : > { %635 = dma.done.wait (%p740_p8), %s181_s30, 1024  }
  0x2c   : > { %637 = vsyncadd (%p740_p8), %s181_s30, 4294966272  ;;  %v669_v0 = vmov 0   ;;  %v293_v1 = vld [vmem:[%s926_s1 + $0x10] sm:$0xff]  ;;  %v291_v2 = vld [vmem:[%s926_s1] sm:$0xff]  ;;  %s482_s8 = sshll.u32 %s656_s15, 10  ;;  %s364_s10 = scalar_lea.sflag [#allocation4], %s777_s28 }
  0x2d   : > { %551 = vset.pattern.permute.xlu1 %v669_v0  ;;  %550 = vset.pattern.permute.xlu0 %v669_v0  ;;  %v294_v3 = vld [vmem:[%s926_s1 + $0x18] sm:$0xff]  ;;  %v292_v4 = vld [vmem:[%s926_s1 + $0x8] sm:$0xff]  ;;  %v323_v6 = vld [vmem:[%s927_s2] sm:$0xff]  ;;  %s877_s15 = scalar_lea.hbm %s928_s3, %s482_s8  ;;  %s670_s11 = smov [#allocation5]  }
  0x2e   : > { %307 = vperm.xlu1 %551, %v293_v1   ;;  %297 = vperm.xlu0 %550, %v291_v2   ;;  %v324_v5 = vld [vmem:[%s927_s2 + $0x8] sm:$0xff]  ;;  %v326_v7 = vld [vmem:[%s927_s2 + $0x18] sm:$0xff]  ;;  %v325_v8 = vld [vmem:[%s927_s2 + $0x10] sm:$0xff]  ;;  %s588_s18 = sshll.u32 %s670_s11, 4  ;;  %s589_s18 = int_to_ptr.vmem [resolvable:$false] %s588_s18 }
  0x2f   : > { %v814_v9 = vld [vmem:[%s783_s4] sm:$0xff]  ;;  %v817_v10 = vld [vmem:[%s783_s4 + $0x10] sm:$0xff]  ;;  %v820_v11 = vld [vmem:[%s783_s4 + $0x8] sm:$0xff]  ;;  %s590_s19 = scalar_lea.vmem %s589_s18, 2048 }
  0x30   : > { %v823_v12 = vld [vmem:[%s783_s4 + $0x18] sm:$0xff]  ;;  %v217_v13 = vadd.f32 %v817_v10, %v814_v9  ;;  %v237_v14 = vmul.f32 %v814_v9, %v814_v9  ;;  %v239_v15 = vmul.f32 %v817_v10, %v817_v10  ;;  %v832_v16 = vld [vmem:[%s783_s4 + $0x20] sm:$0xff]  ;;  %v238_v18 = vmul.f32 %v820_v11, %v820_v11  ;;  %v841_v20 = vld [vmem:[%s783_s4 + $0x28] sm:$0xff] }
  0x31   : > { %v226_v17 = vadd.f32 %v823_v12, %v820_v11  ;;  %v240_v19 = vmul.f32 %v823_v12, %v823_v12  ;;  %v241_v22 = vmul.f32 %v832_v16, %v832_v16  ;;  %v847_v24 = vld [vmem:[%s783_s4 + $0x30] sm:$0xff]  ;;  %v242_v26 = vmul.f32 %v841_v20, %v841_v20  ;;  %v853_v28 = vld [vmem:[%s783_s4 + $0x38] sm:$0xff]  ;;  %s206_s4 = scalar_lea.vmem [#allocation5], %s474_s29 }
  0x32   : > { %312 = vperm.xlu1 %551, %v294_v3   ;;  %302 = vperm.xlu0 %550, %v292_v4   ;;  %v218_v21 = vadd.f32 %v217_v13, %v832_v16  ;;  %v245_v23 = vadd.f32 %v239_v15, %v237_v14  ;;  %v243_v30 = vmul.f32 %v847_v24, %v847_v24  ;;  %s379_s7 = sshll.u32 %s206_s4, 4  ;;  %s872_s7 = int_to_ptr.vmem [resolvable:$true] %s379_s7 }
  0x33   : > { %v227_v25 = vadd.f32 %v226_v17, %v841_v20  ;;  %v254_v27 = vadd.f32 %v240_v19, %v238_v18  ;;  %v244_v33 = vmul.f32 %v853_v28, %v853_v28  ;;  %s584_s24 = scalar_lea.vmem %s872_s7, 1024  ;;  %p591_p1 = scmp.lt.s32.totalorder %s872_s7, %s589_s18 }
  0x34   : > { %v219_v29 = vadd.f32 %v218_v21, %v847_v24  ;;  %v246_v31 = vadd.f32 %v245_v23, %v241_v22  ;;  %p585_p8 = scmp.ne.s32.totalorder %s872_s7, %s584_s24  ;;  %p592_p3 = scmp.lt.s32.totalorder %s590_s19, %s584_s24 }
  0x35   : > { %v228_v32 = vadd.f32 %v227_v25, %v853_v28  ;;  %v255_v34 = vadd.f32 %v254_v27, %v242_v26 }
  0x36   : > { %334 = vperm.xlu1 %551, %v324_v5   ;;  %329 = vperm.xlu0 %550, %v323_v6   ;;  %v220_v35 = vrot.slane %v219_v29, 4  ;;  %v247_v36 = vadd.f32 %v246_v31, %v243_v30  ;;  %p586_p12 = pnand %p585_p8, %p744_p9  ;;  %p593_p5 = por %p592_p3, %p591_p1 }
  0x37   : > { %v229_v37 = vrot.slane %v228_v32, 4  ;;  %v256_v38 = vadd.f32 %v255_v34, %v244_v33 }
  0x38   : > { %v221_v39 = vadd.f32 %v220_v35, %v219_v29  ;;  %v248_v40 = vrot.slane %v247_v36, 4  ;;  %p587_p0 = pneg %p586_p12 }
  0x39   : > { %v230_v41 = vadd.f32 %v229_v37, %v228_v32  ;;  %v257_v42 = vrot.slane %v256_v38, 4 }
  0x3a   : > { %344 = vperm.xlu1 %551, %v326_v7   ;;  %339 = vperm.xlu0 %550, %v325_v8   ;;  %v222_v43 = vrot.slane %v221_v39, 2  ;;  %v249_v44 = vadd.f32 %v248_v40, %v247_v36  ;;  %p594_p6 = pnand %p593_p5, %p587_p0 }
  0x3b   : > { %v231_v45 = vrot.slane %v230_v41, 2  ;;  %v258_v46 = vadd.f32 %v257_v42, %v256_v38 }
  0x3c   : > { %v223_v47 = vadd.f32 %v222_v43, %v221_v39  ;;  %v250_v48 = vrot.slane %v249_v44, 2 }
  0x3d   : > { %v232_v49 = vadd.f32 %v231_v45, %v230_v41  ;;  %v259_v50 = vrot.slane %v258_v46, 2 }
  0x3e   : > { %v224_v51 = vrot.slane %v223_v47, 1  ;;  %v251_v52 = vadd.f32 %v250_v48, %v249_v44 }
  0x3f   : > { %v233_v53 = vrot.slane %v232_v49, 1  ;;  %v260_v54 = vadd.f32 %v259_v50, %v258_v46 }
  0x40   : > { %v225_v55 = vadd.f32 %v224_v51, %v223_v47  ;;  %v252_v56 = vrot.slane %v251_v52, 1 }
  0x41   : > { %v234_v57 = vadd.f32 %v233_v53, %v232_v49  ;;  %v261_v58 = vrot.slane %v260_v54, 1 }
  0x42   : > { %v235_v59 = vmul.f32 0.03125, %v225_v55  ;;  %v253_v60 = vadd.f32 %v252_v56, %v251_v52 }
  0x43   : > { %v236_v61 = vmul.f32 0.03125, %v234_v57  ;;  %v262_v62 = vadd.f32 %v261_v58, %v260_v54 }
  0x44   : > { %v263_v63 = vmul.f32 0.03125, %v253_v60  ;;  %v265_v0 = vmul.f32 %v235_v59, %v235_v59  ;;  %v275_v14 = vsub.f32 %v814_v9, %v235_v59  ;;  %v277_v17 = vsub.f32 %v817_v10, %v235_v59 }
  0x45   : > { %v264_v1 = vmul.f32 0.03125, %v262_v62  ;;  %v266_v2 = vmul.f32 %v236_v61, %v236_v61  ;;  %v276_v15 = vsub.f32 %v820_v11, %v236_v61  ;;  %v278_v18 = vsub.f32 %v823_v12, %v236_v61 }
  0x46   : > { %v267_v3 = vsub.f32 %v263_v63, %v265_v0  ;;  %v279_v23 = vsub.f32 %v832_v16, %v235_v59  ;;  %v280_v25 = vsub.f32 %v841_v20, %v236_v61  ;;  %v281_v26 = vsub.f32 %v847_v24, %v235_v59 }
  0x47   : > { %v268_v4 = vsub.f32 %v264_v1, %v266_v2  ;;  %v282_v27 = vsub.f32 %v853_v28, %v236_v61 }
  0x48   : > { %v269_v5 = vmax.f32 %v267_v3, 0.0 }
  0x49   : > { %v270_v6 = vmax.f32 %v268_v4, 0.0 }
  0x4a   : > { %v271_v7 = vadd.f32 1e-06, %v269_v5 }
  0x4b   : > { %v272_v8 = vadd.f32 1e-06, %v270_v6 }
  0x4c   : > { %552 = vrsqrt.f32 %v271_v7 }
  0x4d   : > { %554 = vrsqrt.f32 %v272_v8 }
  0x59   : > { %v553_v13 = vpop.eup %552 }
  0x5a   : > { %v555_v19 = vpop.eup %554  ;;  %v283_v29 = vmul.f32 %v553_v13, %v275_v14  ;;  %v285_v30 = vmul.f32 %v553_v13, %v277_v17  ;;  %v287_v32 = vmul.f32 %v553_v13, %v279_v23  ;;  %v289_v33 = vmul.f32 %v553_v13, %v281_v26 }
  0x5b   : > { %v284_v9 = vmul.f32 %v555_v19, %v276_v15  ;;  %v286_v11 = vmul.f32 %v555_v19, %v278_v18  ;;  %v288_v12 = vmul.f32 %v555_v19, %v280_v25  ;;  %v290_v34 = vmul.f32 %v555_v19, %v282_v27 }
  0xa9   : > { %v308_v21 = vpop.permute.xlu1 %307  ;;  %v298_v22 = vpop.permute.xlu0 %297 }
  0xaa   : > { %v315_v35 = vmul.f32 %v298_v22, %v283_v29  ;;  %v316_v16 = vmul.f32 %v298_v22, %v284_v9  ;;  %v319_v41 = vmul.f32 %v308_v21, %v287_v32  ;;  %v320_v42 = vmul.f32 %v308_v21, %v288_v12 }
  0xad   : > { %v313_v31 = vpop.permute.xlu1 %312  ;;  %v303_v10 = vpop.permute.xlu0 %302 }
  0xae   : > { %v317_v36 = vmul.f32 %v303_v10, %v285_v30  ;;  %v318_v20 = vmul.f32 %v303_v10, %v286_v11  ;;  %v321_v43 = vmul.f32 %v313_v31, %v289_v33  ;;  %v322_v44 = vmul.f32 %v313_v31, %v290_v34 }
  0xb1   : > { %v335_v24 = vpop.permute.xlu1 %334  ;;  %v330_v28 = vpop.permute.xlu0 %329 }
  0xb2   : > { %v349_v37 = vadd.f32 %v335_v24, %v317_v36  ;;  %v350_v38 = vadd.f32 %v335_v24, %v318_v20  ;;  %v347_v39 = vadd.f32 %v330_v28, %v315_v35  ;;  %v348_v40 = vadd.f32 %v330_v28, %v316_v16 }
  0xb4   : > { %357 = vst [vmem:[%s206_s4 + $0x10] sm:$0xff] %v349_v37  ;;  %358 = vst [vmem:[%s206_s4 + $0x18] sm:$0xff] %v350_v38 }
  0xb5   : > { %355 = vst [vmem:[%s206_s4] sm:$0xff] %v347_v39  ;;  %356 = vst [vmem:[%s206_s4 + $0x8] sm:$0xff] %v348_v40  ;;  %v345_v45 = vpop.permute.xlu1 %344  ;;  %v340_v46 = vpop.permute.xlu0 %339 }
  0xb6   : > { %v353_v47 = vadd.f32 %v345_v45, %v321_v43  ;;  %v354_v48 = vadd.f32 %v345_v45, %v322_v44  ;;  %v351_v49 = vadd.f32 %v340_v46, %v319_v41  ;;  %v352_v50 = vadd.f32 %v340_v46, %v320_v42 }
  0xb8   : > { %361 = vst [vmem:[%s206_s4 + $0x30] sm:$0xff] %v353_v47  ;;  %362 = vst [vmem:[%s206_s4 + $0x38] sm:$0xff] %v354_v48 }
  0xb9   : > { %359 = vst [vmem:[%s206_s4 + $0x20] sm:$0xff] %v351_v49  ;;  %360 = vst [vmem:[%s206_s4 + $0x28] sm:$0xff] %v352_v50 }
  0xba   : > { %597 = shalt.err (!%p594_p6)
}
  0xbb   : > { %s598_s21 = scalar_lea.hbm %s877_s15, 1024  ;;  %s602_s30 = scalar_lea.hbm %s928_s3, 2048 }
  0xbc   : > { %p599_p7 = scmp.ne.s32.totalorder %s877_s15, %s598_s21  ;;  %p603_p13 = scmp.lt.s32.totalorder %s877_s15, %s928_s3 }
  0xbd   : > { %p604_p2 = scmp.lt.s32.totalorder %s602_s30, %s598_s21 }
  0xbe   : > { %p600_p10 = pnand %p599_p7, %p744_p9 }
  0xbf   : > { %p605_p8 = por %p604_p2, %p603_p13 }
  0xc0   : > { %p601_p4 = pneg %p600_p10 }
  0xc2   : > { %p606_p12 = pnand %p605_p8, %p601_p4 }
  0xc4   : > { %609 = shalt.err (!%p606_p12)
}
  0xc5   : > { %s671_s4 = smov 256   ;;  %s672_s8 = smov 16  }
  0xc6   : > { %485 = dma.vmem_to_hbm [thread:$0]  (%p744_p9), %s872_s7, 1024, %s877_s15, %s364_s10, %s671_s4, %s671_s4, %s672_s8  }
  0xc7 PF: > { %s394_s29 = sand.u32 1, %s644_s12   ;;  %p934_p0 = scmp.ge.s32.totalorder %s664_s17, 2 }
  0xc8   : > { %s395_s9 = scalar_lea.sflag [#allocation4], %s394_s29 }
  0xc9   : > { %p492_p1 = pnand %p934_p0, %p751_p11 }
  0xcb   : > { %p493_p3 = pneg %p492_p1 }
  0xcd   : > { %639 = dma.done.wait (%p493_p3), %s395_s9, 1024  }
  0xce   : > { %641 = vsyncadd (%p493_p3), %s395_s9, 4294966272  ;;  %s19_s17 = sadd.s32 1, %s664_s17   ;;  %s935_s12 = smov %s648_s13 }
  0xcf   : > { %p16_p5 = scmp.ge.s32.totalorder %s19_s17, 4   ;;  %s936_s13 = smov %s652_s14 }
  0xd0   : > { %s937_s14 = smov %s749_s26  ;;  %s938_s15 = smov %s660_s16 }
  0xd1   : > { %s939_s16 = smov %s941_s20  ;;  %18 = sbr.rel (!%p16_p5) target bundleno = 6 (0x6), region = 77 }
  0xd6   :  { %400 = vsyncpa [#allocation3], 1 }
  0xd7   :  { %402 = vsyncpa [#allocation3 + $0x1], 1 }
  0xd8   :  { %403 = vsyncpa [#allocation4], 1 }
  0xd9   :  { %405 = vsyncpa [#allocation4 + $0x1], 1 }

</bundles_post_ra>
